<compile_context>
chip_gen: v6e
topology: v6e:2x2x1
jax: 0.10.0
libtpu: 0.0.40
codegen_flags: <defaults>
</compile_context>

<pallas_src>
import functools
from typing import NamedTuple, Optional

import jax
import jax.numpy as jnp
from jax.experimental import pallas as pl
from jax.experimental.pallas import tpu as pltpu


def _round_up(x: int, m: int) -> int:
    return ((x + m - 1) // m) * m


def _cdiv(a: int, b: int) -> int:
    return (a + b - 1) // b


def _bernoulli_conv1x1_kernel(x_ref, w_ref, b_ref, *out_refs, with_probs, use_mxu):
    # x_ref:      (nb, C_in, tS)   lane-dense spatial tile, nb batch rows
    # w_ref:      (C_out, C_in)    tiny, resident across the whole grid
    # b_ref:      (C_out, 1)
    # out_refs[0]: logits (nb, C_out, tS)
    # out_refs[1]: probs  (nb, C_out, tS)   [only when with_probs]
    logits_ref = out_refs[0]
    w = w_ref[...]
    b = b_ref[...]
    nb = x_ref.shape[0]
    c_in = x_ref.shape[1]

    # nb is small by construction (<= 16), so a static per-batch-row unroll keeps every
    # op a proven 2-D lane-dense formulation.
    for bb in range(nb):
        x = x_ref[bb]                                   # (C_in, tS)
        if use_mxu:
            # Larger channel counts: MXU matmul.
            logits = jnp.dot(w, x, preferred_element_type=jnp.float32) + b
        else:
            # Tiny channel counts: unrolled VPU multiply-add chain.
            # (C_out,1) * (1,tS) -> (C_out,tS); static Python loop, traced once.
            acc = w[:, 0:1] * x[0:1, :]
            for c in range(1, c_in):
                acc = acc + w[:, c:c + 1] * x[c:c + 1, :]
            logits = acc + b

        logits_ref[bb] = logits.astype(logits_ref.dtype)
        if with_probs:
            # sigmoid -> EUP slot; free under the DMA bottleneck.
            out_refs[1][bb] = jax.nn.sigmoid(logits).astype(out_refs[1].dtype)


def _choose_tiles(N, C_in, C_out, S, *, target_step_bytes, vmem_budget_bytes,
                  max_batch_block=16):
    """Pick (nb, tS): batch rows and spatial (lane) columns per grid step."""
    bytes_per_col = (C_in + C_out) * 4          # f32 input row + output row per column
    S128 = _round_up(S, 128)

    # Spatial tile: multiple of 128, large enough to hit ~target bytes per step, capped
    # by the whole image and by the double-buffered VMEM budget.
    want_cols = _round_up(max(128, target_step_bytes // bytes_per_col), 128)
    vmem_cols = max(128, (vmem_budget_bytes // (2 * bytes_per_col)) // 128 * 128)
    tS = max(128, min(S128, want_cols, vmem_cols))

    # Batch blocking: if one tile already covers the image, amortize the fixed per-step
    # overhead over several batch rows (cap keeps the in-kernel unroll/trace small).
    nb = 1
    if tS >= S128 and N > 1:
        step_bytes = bytes_per_col * tS
        nb = min(N, max_batch_block, max(1, target_step_bytes // max(step_bytes, 1)))
        while nb > 1 and 2 * nb * bytes_per_col * tS > vmem_budget_bytes:
            nb -= 1

    # Keep >= 2 grid steps along a "parallel" axis when possible (v7x: 2 TCs per chip).
    if _cdiv(N, nb) * _cdiv(S, tS) < 2:
        if N > 1:
            nb = _cdiv(N, 2)
        elif S128 > 128:
            tS = max(128, _round_up(_cdiv(S128, 2), 128))
    return nb, tS


def bernoulli_conv_logits(x_nchw, weight, bias, *, with_probs=False,
                          target_step_bytes=2 << 20, vmem_budget_bytes=8 << 20):
    """1x1-conv logits (Bernoulli parameters), computed in a Pallas kernel.

    Args:
      x_nchw: (N, C_in, H, W) float32
      weight: (C_out, C_in, 1, 1) float32   (PyTorch Conv2d weight layout)
      bias:   (C_out,) float32
      with_probs: also return probs = sigmoid(logits), fused in-kernel (EUP).
    Returns:
      logits (N, C_out, H, W), or (logits, probs) if with_probs.
    """
    N, C_in, H, W = x_nchw.shape
    C_out = weight.shape[0]
    S = H * W

    # Free reshapes only (no transposes, no padding): spatial is the lane dimension.
    x_flat = x_nchw.reshape(N, C_in, S)
    w_mat = weight.reshape(C_out, C_in)
    b_mat = bias.reshape(C_out, 1)

    nb, tS = _choose_tiles(N, C_in, C_out, S,
                           target_step_bytes=target_step_bytes,
                           vmem_budget_bytes=vmem_budget_bytes)
    grid = (_cdiv(N, nb), _cdiv(S, tS))

    # TODO(synk): threshold could be chip-dependent (profile); <=8 keeps the VPU path
    # off the critical path on v7x's faster HBM while still covering tiny-channel cases.
    use_mxu = not (C_in <= 8 and C_out <= 8)

    kernel = functools.partial(_bernoulli_conv1x1_kernel,
                               with_probs=with_probs, use_mxu=use_mxu)

    n_outs = 2 if with_probs else 1
    out_shape = tuple(jax.ShapeDtypeStruct((N, C_out, S), jnp.float32)
                      for _ in range(n_outs))
    out_specs = tuple(pl.BlockSpec((nb, C_out, tS), lambda n, s: (n, 0, s))
                      for _ in range(n_outs))

    outs = pl.pallas_call(
        kernel,
        out_shape=out_shape,
        grid_spec=pltpu.PrefetchScalarGridSpec(
            num_scalar_prefetch=0,
            grid=grid,
            in_specs=[
                pl.BlockSpec((nb, C_in, tS), lambda n, s: (n, 0, s)),
                pl.BlockSpec((C_out, C_in), lambda n, s: (0, 0)),
                pl.BlockSpec((C_out, 1), lambda n, s: (0, 0)),
            ],
            out_specs=out_specs,
        ),
        compiler_params=pltpu.CompilerParams(
            dimension_semantics=("parallel", "parallel")),
    )(x_flat, w_mat, b_mat)

    logits = outs[0].reshape(N, C_out, H, W)     # free reshape back to NCHW
    if with_probs:
        probs = outs[1].reshape(N, C_out, H, W)
        return logits, probs
    return logits


class BernoulliDist(NamedTuple):
    """Minimal stand-in for torch.distributions.Bernoulli(logits=...)."""
    logits: jax.Array
    fused_probs: Optional[jax.Array] = None

    @property
    def probs(self):
        if self.fused_probs is not None:
            return self.fused_probs
        # Derived lazily (outside the kernel), like torch's Bernoulli.probs.
        return jax.nn.sigmoid(self.logits)


def bernoulli_distribution_conv_layer(x_nchw, weight, bias, *, fuse_probs=False):
    if fuse_probs:
        logits, probs = bernoulli_conv_logits(x_nchw, weight, bias, with_probs=True)
        return BernoulliDist(logits=logits, fused_probs=probs)
    return BernoulliDist(logits=bernoulli_conv_logits(x_nchw, weight, bias))


if __name__ == "__main__":
    key = jax.random.PRNGKey(0)
    k_x, k_w, k_b, k_x2 = jax.random.split(key, 4)

    # Small shapes implied by the module: in channels=4, out_features=8.
    N, C_in, Hdim, Wdim = 2, 4, 16, 16
    C_out = 8

    x = jax.random.normal(k_x, (N, C_in, Hdim, Wdim), dtype=jnp.float32)

    # Deterministic parameter init (Conv2d-style uniform fan-in bound).
    fan_in = C_in * 1 * 1
    bound = 1.0 / jnp.sqrt(fan_in)
    weight = jax.random.uniform(k_w, (C_out, C_in, 1, 1),
                                minval=-bound, maxval=bound, dtype=jnp.float32)
    bias = jax.random.uniform(k_b, (C_out,),
                              minval=-bound, maxval=bound, dtype=jnp.float32)

    w_mat = weight.reshape(C_out, C_in)

    def ref_logits_fn(xi):
        return (jnp.einsum("nchw,oc->nohw", xi, w_mat)
                + bias.reshape(1, C_out, 1, 1))

    # 1) Plain logits path (lazy probs — torch Bernoulli parity).
    logits = jax.jit(bernoulli_conv_logits)(x, weight, bias)
    jax.block_until_ready(logits)
    assert logits.shape == (N, C_out, Hdim, Wdim)
    assert jnp.allclose(logits, ref_logits_fn(x), atol=1e-5, rtol=1e-5)

    # 2) Fused-probs path (sigmoid on the EUP inside the kernel).
    logits2, probs2 = jax.jit(
        functools.partial(bernoulli_conv_logits, with_probs=True))(x, weight, bias)
    jax.block_until_ready(probs2)
    assert jnp.allclose(logits2, ref_logits_fn(x), atol=1e-5, rtol=1e-5)
    assert jnp.allclose(probs2, jax.nn.sigmoid(ref_logits_fn(x)), atol=1e-5, rtol=1e-5)

    # 3) Batch-blocked + ragged-spatial path: N=8, H=W=10 -> S=100 (not a 128 multiple),
    #    exercises cdiv grids, masked ragged blocks and nb>1 batch blocking.
    N2, H2, W2 = 8, 10, 10
    x2 = jax.random.normal(k_x2, (N2, C_in, H2, W2), dtype=jnp.float32)
    logits3 = jax.jit(bernoulli_conv_logits)(x2, weight, bias)
    jax.block_until_ready(logits3)
    assert logits3.shape == (N2, C_out, H2, W2)
    assert jnp.allclose(logits3, ref_logits_fn(x2), atol=1e-5, rtol=1e-5)

    # Distribution wrapper.
    dist = bernoulli_distribution_conv_layer(x, weight, bias)
    assert dist.probs.shape == (N, C_out, Hdim, Wdim)
    assert jnp.allclose(dist.probs, jax.nn.sigmoid(ref_logits_fn(x)),
                        atol=1e-5, rtol=1e-5)

    print("KERNEL_OK")
</pallas_src>

<mosaic_0001>
module attributes {stable_mosaic.version = 11 : i64} {
  func.func @_bernoulli_conv1x1_kernel(%arg0: i32, %arg1: i32, %arg2: memref<1x4x256xf32, #tpu.memory_space<vmem>>, %arg3: memref<8x4xf32, #tpu.memory_space<vmem>>, %arg4: memref<8x1xf32, #tpu.memory_space<vmem>>, %arg5: memref<1x8x256xf32, #tpu.memory_space<vmem>>) attributes {dimension_semantics = [#tpu.dimension_semantics<parallel>, #tpu.dimension_semantics<parallel>], iteration_bounds = array<i64: 2, 1>, scalar_prefetch = 0 : i64, scratch_operands = 0 : i64, tpu.core_type = #tpu.core_type<tc>, window_params = [{transform_indices = @transform_0, window_bounds = array<i64: 1, 4, 256>}, {pipeline_mode = #tpu.pipeline_mode<synchronous>, transform_indices = @transform_1, window_bounds = array<i64: 8, 4>}, {pipeline_mode = #tpu.pipeline_mode<synchronous>, transform_indices = @transform_2, window_bounds = array<i64: 8, 1>}, {transform_indices = @transform_3, window_bounds = array<i64: 1, 8, 256>}]} {
    %c0 = arith.constant 0 : index
    %c0_0 = arith.constant 0 : index
    %0 = vector.load %arg3[%c0, %c0_0] : memref<8x4xf32, #tpu.memory_space<vmem>>, vector<8x4xf32>
    %c0_1 = arith.constant 0 : index
    %c0_2 = arith.constant 0 : index
    %1 = vector.load %arg4[%c0_1, %c0_2] : memref<8x1xf32, #tpu.memory_space<vmem>>, vector<8x1xf32>
    %c0_3 = arith.constant 0 : index
    %c0_4 = arith.constant 0 : index
    %c0_5 = arith.constant 0 : index
    %2 = vector.load %arg2[%c0_3, %c0_4, %c0_5] : memref<1x4x256xf32, #tpu.memory_space<vmem>>, vector<1x4x256xf32>
    %3 = vector.shape_cast %2 : vector<1x4x256xf32> to vector<4x256xf32>
    %4 = vector.extract_strided_slice %0 {offsets = [0, 0], sizes = [8, 1], strides = [1, 1]} : vector<8x4xf32> to vector<8x1xf32>
    %5 = vector.extract_strided_slice %3 {offsets = [0, 0], sizes = [1, 256], strides = [1, 1]} : vector<4x256xf32> to vector<1x256xf32>
    %6 = vector.broadcast %4 : vector<8x1xf32> to vector<8x256xf32>
    %7 = vector.broadcast %5 : vector<1x256xf32> to vector<8x256xf32>
    %8 = arith.mulf %6, %7 : vector<8x256xf32>
    %9 = vector.extract_strided_slice %0 {offsets = [0, 1], sizes = [8, 1], strides = [1, 1]} : vector<8x4xf32> to vector<8x1xf32>
    %10 = vector.extract_strided_slice %3 {offsets = [1, 0], sizes = [1, 256], strides = [1, 1]} : vector<4x256xf32> to vector<1x256xf32>
    %11 = vector.broadcast %9 : vector<8x1xf32> to vector<8x256xf32>
    %12 = vector.broadcast %10 : vector<1x256xf32> to vector<8x256xf32>
    %13 = arith.mulf %11, %12 : vector<8x256xf32>
    %14 = arith.addf %8, %13 : vector<8x256xf32>
    %15 = vector.extract_strided_slice %0 {offsets = [0, 2], sizes = [8, 1], strides = [1, 1]} : vector<8x4xf32> to vector<8x1xf32>
    %16 = vector.extract_strided_slice %3 {offsets = [2, 0], sizes = [1, 256], strides = [1, 1]} : vector<4x256xf32> to vector<1x256xf32>
    %17 = vector.broadcast %15 : vector<8x1xf32> to vector<8x256xf32>
    %18 = vector.broadcast %16 : vector<1x256xf32> to vector<8x256xf32>
    %19 = arith.mulf %17, %18 : vector<8x256xf32>
    %20 = arith.addf %14, %19 : vector<8x256xf32>
    %21 = vector.extract_strided_slice %0 {offsets = [0, 3], sizes = [8, 1], strides = [1, 1]} : vector<8x4xf32> to vector<8x1xf32>
    %22 = vector.extract_strided_slice %3 {offsets = [3, 0], sizes = [1, 256], strides = [1, 1]} : vector<4x256xf32> to vector<1x256xf32>
    %23 = vector.broadcast %21 : vector<8x1xf32> to vector<8x256xf32>
    %24 = vector.broadcast %22 : vector<1x256xf32> to vector<8x256xf32>
    %25 = arith.mulf %23, %24 : vector<8x256xf32>
    %26 = arith.addf %20, %25 : vector<8x256xf32>
    %27 = vector.broadcast %1 : vector<8x1xf32> to vector<8x256xf32>
    %28 = arith.addf %26, %27 : vector<8x256xf32>
    %c0_6 = arith.constant 0 : index
    %c0_7 = arith.constant 0 : index
    %c0_8 = arith.constant 0 : index
    %29 = vector.load %arg5[%c0_6, %c0_7, %c0_8] : memref<1x8x256xf32, #tpu.memory_space<vmem>>, vector<1x8x256xf32>
    %30 = vector.shape_cast %29 : vector<1x8x256xf32> to vector<8x256xf32>
    %31 = vector.shape_cast %28 : vector<8x256xf32> to vector<1x8x256xf32>
    tpu.vector_store %arg5[%c0_6, %c0_7, %c0_8], %31 {strides = array<i32>} : memref<1x8x256xf32, #tpu.memory_space<vmem>>, vector<1x8x256xf32>,
    return
  }
  func.func @transform_0(%arg0: i32, %arg1: i32) -> (i32, i32, i32) {
    %c0_i32 = arith.constant 0 : i32
    %c0_i32_0 = arith.constant 0 : i32
    return %arg0, %c0_i32, %arg1 : i32, i32, i32
  }
  func.func @transform_1(%arg0: i32, %arg1: i32) -> (i32, i32) {
    %c0_i32 = arith.constant 0 : i32
    %c0_i32_0 = arith.constant 0 : i32
    %c0_i32_1 = arith.constant 0 : i32
    return %c0_i32, %c0_i32_0 : i32, i32
  }
  func.func @transform_2(%arg0: i32, %arg1: i32) -> (i32, i32) {
    %c0_i32 = arith.constant 0 : i32
    %c0_i32_0 = arith.constant 0 : i32
    %c0_i32_1 = arith.constant 0 : i32
    return %c0_i32, %c0_i32_0 : i32, i32
  }
  func.func @transform_3(%arg0: i32, %arg1: i32) -> (i32, i32, i32) {
    %c0_i32 = arith.constant 0 : i32
    %c0_i32_0 = arith.constant 0 : i32
    return %arg0, %c0_i32, %arg1 : i32, i32, i32
  }
}

</mosaic_0001>

<bundles_post_ra>
// kernel: bernoulli_conv_logits.1
= control target key start
LH: loop header
LB: loop body
LE: loop exit
PB: predicated region body
PF: predicated region fallthrough
CT: control target
= control target key end

     0   :  { %s508_s12 = smov 0   ;;  %s510_s13 = smov 0   ;;  %s551_s0 = inlined_call_operand.vmem [shape: f32[2,4,256], index: 0, kind: input, shape index: {}]   ;;  %s552_s1 = inlined_call_operand.vmem [shape: f32[8,4], index: 1, kind: input, shape index: {}]   ;;  %s553_s2 = inlined_call_operand.vmem [shape: f32[8,1], index: 2, kind: input, shape index: {}]   ;;  %s554_s3 = inlined_call_operand.vmem [shape: f32[2,8,256], index: 3, kind: output, shape index: {}]  }
   0x1   :  { %s512_s14 = smov 0  }
   0x2 LB: > { %s25_s15 = sadd.s32 1, %s478_s13  ;;  %p417_p0 = scmp.ge.s32.totalorder %s482_s14, 1  ;;  %s482_s14 = sphi %s512_s14, %s13_s14   ;;  %s478_s13 = sphi %s510_s13, %s556_s13   ;;  %s474_s12 = sphi %s508_s12, %s555_s12  }
   0x3   : > { %p27_p1 = scmp.ge.s32.totalorder %s25_s15, 2  ;;  %p158_p2 = scmp.lt.s32.totalorder %s482_s14, 3 }
   0x5   : > { %s558_s15 = smov (%p27_p1, %s25_s15), 0  ;;  %p159_p3 = pnand %p417_p0, %p158_p2 }
   0x6   : > { %p191_p4 = scmp.lt.s32.totalorder (!%p159_p3), %s474_s12, 1 }
   0x7   : > { %162 = sbr.rel (%p159_p3) target bundleno = 154 (0x9a), region = 32 }
   0xc   : > { %v210_v0 = vld [vmem:[%s552_s1] sm:$0xff]  ;;  %v484_v1 = vmov 0   ;;  %v485_v2 = vmov 2   ;;  %v486_v3 = vmov 1   ;;  %v487_v4 = vmov 3   ;;  %s560_s12 = smov (!%p191_p4, %s474_s12), 1 }
   0xd   : > { %454 = vset.pattern.permute.xlu0 %v484_v1  ;;  %456 = vset.pattern.permute.xlu1 %v485_v2  ;;  %v211_v5 = vld [vmem:[%s553_s2] sm:$0xff]  ;;  %v219_v6 = vlaneseq  ;;  %s424_s20 = sshll.u32 %s560_s12, 3  ;;  %s425_s24 = sshll.u32 %s560_s12, 4 }
   0xe   : > { %215 = vperm.xlu0 %454, %v210_v0   ;;  %266 = vperm.xlu1 %456, %v210_v0   ;;  %s198_s23 = scalar_lea.vmem %s551_s0, %s424_s20  ;;  %s208_s27 = scalar_lea.vmem %s554_s3, %s425_s24 }
   0xf   : > { %v220_v7 = vshrl.u32 %v219_v6, 7  ;;  %v212_v12 = vld [vmem:[%s198_s23] sm:$0xff] }
  0x11   : > { %v221_v8 = vsub.s32 0, %v220_v7  ;;  %v225_v9 = vsub.s32 4, %v220_v7  ;;  %v245_v10 = vsub.s32 1, %v220_v7  ;;  %v249_v11 = vsub.s32 5, %v220_v7 }
  0x12   : > { %455 = vset.pattern.permute.xlu0 %v486_v3  ;;  %457 = vset.pattern.permute.xlu1 %v487_v4  ;;  %v271_v13 = vsub.s32 2, %v220_v7  ;;  %v275_v14 = vsub.s32 6, %v220_v7  ;;  %v297_v15 = vsub.s32 3, %v220_v7  ;;  %v301_v16 = vsub.s32 7, %v220_v7 }
  0x13   : > { %240 = vperm.xlu0 %455, %v210_v0   ;;  %292 = vperm.xlu1 %457, %v210_v0   ;;  %v222_v17 = vrot.slane %v212_v12, %v221_v8  ;;  %v226_v18 = vrot.slane %v212_v12, %v225_v9  ;;  %v246_v19 = vrot.slane %v212_v12, %v245_v10 }
  0x14   : > { %v250_v20 = vrot.slane %v212_v12, %v249_v11  ;;  %v272_v21 = vrot.slane %v212_v12, %v271_v13  ;;  %v276_v22 = vrot.slane %v212_v12, %v275_v14  ;;  %v298_v25 = vrot.slane %v212_v12, %v297_v15 }
  0x15   : > { %v302_v26 = vrot.slane %v212_v12, %v301_v16  ;;  %v232_v27 = vrot.slane %v222_v17, %v221_v8  ;;  %v236_v28 = vrot.slane %v226_v18, %v221_v8  ;;  %v256_v29 = vrot.slane %v246_v19, %v245_v10 }
  0x16   : > { %v260_v30 = vrot.slane %v250_v20, %v245_v10  ;;  %v282_v31 = vrot.slane %v272_v21, %v271_v13  ;;  %v286_v32 = vrot.slane %v276_v22, %v271_v13  ;;  %v308_v33 = vrot.slane %v298_v25, %v297_v15 }
  0x17   : > { %458 = vset.pattern.permute.xlu1 %v484_v1  ;;  %459 = vset.pattern.permute.xlu0 %v484_v1  ;;  %v312_v34 = vrot.slane %v302_v26, %v297_v15 }
  0x18   : > { %319 = vperm.xlu1 %458, %v211_v5  }
  0x89   : > { %v216_v23 = vpop.permute.xlu0 %215  ;;  %v267_v24 = vpop.permute.xlu1 %266 }
  0x8a   : > { %v237_v37 = vmul.f32 %v232_v27, %v216_v23  ;;  %v238_v38 = vmul.f32 %v236_v28, %v216_v23  ;;  %v287_v41 = vmul.f32 %v282_v31, %v267_v24  ;;  %v288_v42 = vmul.f32 %v286_v32, %v267_v24 }
  0x8e   : > { %v241_v35 = vpop.permute.xlu0 %240  ;;  %v293_v36 = vpop.permute.xlu1 %292 }
  0x8f   : > { %v261_v39 = vmul.f32 %v256_v29, %v241_v35  ;;  %v262_v40 = vmul.f32 %v260_v30, %v241_v35  ;;  %v313_v45 = vmul.f32 %v308_v33, %v293_v36  ;;  %v314_v46 = vmul.f32 %v312_v34, %v293_v36 }
  0x91   : > { %v263_v43 = vadd.f32 %v261_v39, %v237_v37  ;;  %v264_v44 = vadd.f32 %v262_v40, %v238_v38 }
  0x93   : > { %v289_v47 = vadd.f32 %v287_v41, %v263_v43  ;;  %v290_v48 = vadd.f32 %v288_v42, %v264_v44  ;;  %v320_v49 = vpop.permute.xlu1 %319 }
  0x95   : > { %v315_v50 = vadd.f32 %v313_v45, %v289_v47  ;;  %v316_v51 = vadd.f32 %v314_v46, %v290_v48 }
  0x97   : > { %v322_v52 = vadd.f32 %v320_v49, %v315_v50  ;;  %v323_v53 = vadd.f32 %v320_v49, %v316_v51 }
  0x99   : > { %324 = vst [vmem:[%s208_s27] sm:$0xff] %v322_v52  ;;  %325 = vst [vmem:[%s208_s27 + $0x8] sm:$0xff] %v323_v53 }
  0x9a PF: > { %s13_s14 = sadd.s32 1, %s482_s14   ;;  %s555_s12 = smov %s478_s13 }
  0x9b   : > { %p10_p5 = scmp.ge.s32.totalorder %s13_s14, 4   ;;  %s556_s13 = smov %s558_s15 }
  0x9d   :  { %12 = sbr.rel (!%p10_p5) target bundleno = 2 (0x2), region = 62 }

</bundles_post_ra>
